<compile_context>
chip_gen: v7x
topology: tpu7x:2x2x1
jax: 0.10.0
libtpu: 0.0.40
codegen_flags: <defaults>
</compile_context>

<pallas_src>
import math

import jax
import jax.numpy as jnp
from jax import lax
from jax.experimental import pallas as pl

# ----------------------------- config ---------------------------------------
BATCH = 2
SEQ = 8
HIDDEN = 32
NUM_HEADS = 4
NUM_KV_HEADS = 2
HEAD_DIM = HIDDEN // NUM_HEADS
NUM_KV_GROUPS = NUM_HEADS // NUM_KV_HEADS
ROPE_THETA = 10000.0

Q_DIM = NUM_HEADS * HEAD_DIM          # 32
KV_DIM = NUM_KV_HEADS * HEAD_DIM      # 16
QK_DIM = Q_DIM + KV_DIM               # 48  (rope'd columns: q then k)
V_OFF = QK_DIM                        # 48  (v columns start)
ROT_OFF = Q_DIM + 2 * KV_DIM          # 64  (rotated q|k columns start)
FUSED_DIM = ROT_OFF + QK_DIM          # 112

# TODO(synk): attention_dropout / past_key_value / use_cope branches are not
# reachable in this synthetic eval-mode forward and are intentionally omitted.


# --------------------------- fused forward kernel ----------------------------
def _fused_attention_kernel(x_ref, w_ref, wo_ref, cos_ref, sin_ref, mask_ref,
                            o_ref):
    f32 = jnp.float32
    mm = (((1,), (0,)), ((), ()))      # A @ B
    qkT = (((1,), (1,)), ((), ()))     # A @ B^T (no explicit transpose)
    D = HEAD_DIM

    # single fused projection: x @ [Wq | Wk | Wv | Wq.R | Wk.R]  (bf16 MXU, f32 acc)
    qkv = lax.dot_general(x_ref[...], w_ref[...], mm,
                          preferred_element_type=f32)          # (B*S, FUSED_DIM)

    # RoPE for q and k in one fused pair of VPU multiplies; rotate_half is
    # already folded into the weights, 1/sqrt(head_dim) into the q cos/sin.
    qk = (qkv[:, :QK_DIM] * cos_ref[...]
          + qkv[:, ROT_OFF:ROT_OFF + QK_DIM] * sin_ref[...])   # (B*S, QK_DIM)
    v = qkv[:, V_OFF:V_OFF + KV_DIM]                           # (B*S, KV_DIM)

    wo = wo_ref[...]                                           # (Q_DIM, H) bf16

    for b in range(BATCH):                                     # static python loop
        q_b = qk[b * SEQ:(b + 1) * SEQ, :Q_DIM]                # (S, NH*D)
        k_b = qk[b * SEQ:(b + 1) * SEQ, Q_DIM:]                # (S, NKV*D)
        v_b = v[b * SEQ:(b + 1) * SEQ, :]                      # (S, NKV*D)
        mask_b = mask_ref[b].astype(f32)                       # (G*S, S), pre-tiled

        o_b = jnp.zeros((SEQ, HIDDEN), f32)
        for g in range(NUM_KV_HEADS):      # each KV head read once (GQA)
            kg = k_b[:, g * D:(g + 1) * D]                     # (S, D)
            vg = v_b[:, g * D:(g + 1) * D]                     # (S, D)

            # stack this KV head's query heads along the sublane axis
            qg = jnp.concatenate(
                [q_b[:, (g * NUM_KV_GROUPS + r) * D:
                        (g * NUM_KV_GROUPS + r + 1) * D]
                 for r in range(NUM_KV_GROUPS)], axis=0)       # (G*S, D)

            s = lax.dot_general(qg, kg, qkT,
                                preferred_element_type=f32)    # (G*S, S)
            s = s + mask_b
            m = jnp.max(s, axis=-1, keepdims=True)
            p = jnp.exp(s - m)
            denom = jnp.sum(p, axis=-1, keepdims=True)
            p = p * pl.reciprocal(denom, approx=True)
            res = lax.dot_general(p, vg, mm,
                                  preferred_element_type=f32)  # (G*S, D)

            # fold head outputs straight into the o-projection (no concat slab)
            res16 = res.astype(wo.dtype)
            for r in range(NUM_KV_GROUPS):
                h = g * NUM_KV_GROUPS + r
                o_b = o_b + lax.dot_general(
                    res16[r * SEQ:(r + 1) * SEQ, :],
                    wo[h * D:(h + 1) * D, :], mm,
                    preferred_element_type=f32)

        o_ref[b * SEQ:(b + 1) * SEQ, :] = o_b.astype(o_ref.dtype)


# ------------------------------- JAX glue ------------------------------------
def rotary_cos_sin(seq_len, dim, base):
    inv_freq = 1.0 / (base ** (jnp.arange(0, dim, 2, dtype=jnp.float32) / dim))
    t = jnp.arange(seq_len, dtype=jnp.float32)
    freqs = jnp.outer(t, inv_freq)
    emb = jnp.concatenate([freqs, freqs], axis=-1)
    return jnp.cos(emb), jnp.sin(emb)


def rotate_half_matrix(d):
    """R such that x @ R == rotate_half(x) for a single head of width d."""
    half = d // 2
    r = jnp.zeros((d, d), jnp.float32)
    r = r.at[jnp.arange(half) + half, jnp.arange(half)].set(-1.0)
    r = r.at[jnp.arange(half), jnp.arange(half) + half].set(1.0)
    return r


def make_causal_mask(bsz, seq_len, dtype):
    i = jnp.arange(seq_len)[:, None]
    j = jnp.arange(seq_len)[None, :]
    m = jnp.where(j <= i, 0.0, jnp.finfo(jnp.float32).min).astype(dtype)
    return jnp.broadcast_to(m[None, None], (bsz, 1, seq_len, seq_len))


def jiutian_attention_forward(hidden_states, wq, wk, wv, wo, attention_mask):
    B, S, H = hidden_states.shape
    out_dtype = hidden_states.dtype

    # fold rotate_half into the projection weights (exact: rotate_half is linear)
    r1 = rotate_half_matrix(HEAD_DIM)
    rq = jnp.kron(jnp.eye(NUM_HEADS, dtype=jnp.float32), r1)       # (Q_DIM, Q_DIM)
    rk = jnp.kron(jnp.eye(NUM_KV_HEADS, dtype=jnp.float32), r1)    # (KV_DIM, KV_DIM)
    w_fused = jnp.concatenate([wq, wk, wv, wq @ rq, wk @ rk], axis=1)  # (H, 112)

    # rope tables, batch-tiled, layout matching fused qkv columns; the
    # 1/sqrt(head_dim) softmax scale is folded into the q columns.
    cos, sin = rotary_cos_sin(S, HEAD_DIM, ROPE_THETA)
    scale = 1.0 / math.sqrt(HEAD_DIM)
    cos_all = jnp.concatenate([jnp.tile(cos, (1, NUM_HEADS)) * scale,
                               jnp.tile(cos, (1, NUM_KV_HEADS))], axis=1)
    sin_all = jnp.concatenate([jnp.tile(sin, (1, NUM_HEADS)) * scale,
                               jnp.tile(sin, (1, NUM_KV_HEADS))], axis=1)
    cos_all = jnp.tile(cos_all, (B, 1)).astype(jnp.float32)        # (B*S, QK_DIM)
    sin_all = jnp.tile(sin_all, (B, 1)).astype(jnp.float32)

    # additive mask [B,1,S,S] -> (B, S, S), pre-tiled along sublanes to match
    # the kv-group-stacked query layout used inside the kernel.
    mask = attention_mask.reshape(B, S, S).astype(jnp.float32)
    mask_tiled = jnp.tile(mask, (1, NUM_KV_GROUPS, 1))             # (B, G*S, S)

    # bf16 operands for the MXU (f32 accumulation inside the kernel)
    x2 = hidden_states.reshape(B * S, H).astype(jnp.bfloat16)
    w_fused = w_fused.astype(jnp.bfloat16)
    wo16 = wo.astype(jnp.bfloat16)

    out2 = pl.pallas_call(
        _fused_attention_kernel,
        out_shape=jax.ShapeDtypeStruct((B * S, H), out_dtype),
        in_specs=[
            pl.BlockSpec((B * S, H), lambda: (0, 0)),              # x slab
            pl.BlockSpec((H, FUSED_DIM), lambda: (0, 0)),          # fused qkv(+rot) weight
            pl.BlockSpec((Q_DIM, H), lambda: (0, 0)),              # o-proj weight
            pl.BlockSpec((B * S, QK_DIM), lambda: (0, 0)),         # cos (q|k merged)
            pl.BlockSpec((B * S, QK_DIM), lambda: (0, 0)),         # sin (q|k merged)
            pl.BlockSpec((B, NUM_KV_GROUPS * S, S), lambda: (0, 0, 0)),  # additive mask
        ],
        out_specs=pl.BlockSpec((B * S, H), lambda: (0, 0)),
    )(x2, w_fused, wo16, cos_all, sin_all, mask_tiled)

    return out2.reshape(B, S, H)


# ------------------------ pure-JAX reference (for checking) ------------------
def reference_forward(hidden_states, wq, wk, wv, wo, attention_mask):
    B, S, H = hidden_states.shape
    q = (hidden_states @ wq).reshape(B, S, NUM_HEADS, HEAD_DIM).transpose(0, 2, 1, 3)
    k = (hidden_states @ wk).reshape(B, S, NUM_KV_HEADS, HEAD_DIM).transpose(0, 2, 1, 3)
    v = (hidden_states @ wv).reshape(B, S, NUM_KV_HEADS, HEAD_DIM).transpose(0, 2, 1, 3)

    cos, sin = rotary_cos_sin(S, HEAD_DIM, ROPE_THETA)
    cos_b, sin_b = cos[None, None], sin[None, None]

    def rot_half(x):
        h = x.shape[-1] // 2
        return jnp.concatenate([-x[..., h:], x[..., :h]], axis=-1)

    q = q * cos_b + rot_half(q) * sin_b
    k = k * cos_b + rot_half(k) * sin_b

    k = jnp.repeat(k, NUM_KV_GROUPS, axis=1)
    v = jnp.repeat(v, NUM_KV_GROUPS, axis=1)

    scores = jnp.einsum("bhqd,bhkd->bhqk", q, k) / math.sqrt(HEAD_DIM)
    scores = scores + attention_mask
    w = jax.nn.softmax(scores.astype(jnp.float32), axis=-1).astype(q.dtype)
    out = jnp.einsum("bhqk,bhkd->bhqd", w, v)
    out = out.transpose(0, 2, 1, 3).reshape(B, S, H)
    return out @ wo


# ---------------------------------- main -------------------------------------
if __name__ == "__main__":
    key = jax.random.PRNGKey(0)
    k_x, k_q, k_k, k_v, k_o = jax.random.split(key, 5)

    hidden_states = jax.random.normal(k_x, (BATCH, SEQ, HIDDEN), dtype=jnp.float32)

    w_scale = 0.05
    # nn.Linear(in, out, bias=False): y = x @ W^T ; we store W^T directly ([in, out]).
    wq = w_scale * jax.random.normal(k_q, (HIDDEN, Q_DIM), jnp.float32)
    wk = w_scale * jax.random.normal(k_k, (HIDDEN, KV_DIM), jnp.float32)
    wv = w_scale * jax.random.normal(k_v, (HIDDEN, KV_DIM), jnp.float32)
    wo = w_scale * jax.random.normal(k_o, (Q_DIM, HIDDEN), jnp.float32)

    attention_mask = make_causal_mask(BATCH, SEQ, jnp.float32)

    out = jiutian_attention_forward(hidden_states, wq, wk, wv, wo, attention_mask)
    out = jax.block_until_ready(out)

    ref = reference_forward(hidden_states, wq, wk, wv, wo, attention_mask)
    ref = jax.block_until_ready(ref)

    assert out.shape == (BATCH, SEQ, HIDDEN), out.shape
    max_err = float(jnp.max(jnp.abs(out - ref)))
    assert jnp.allclose(out, ref, rtol=2e-2, atol=2e-2), (
        "mismatch vs reference: max abs err = %e" % max_err)
    print("KERNEL_OK")
</pallas_src>

<mosaic_0001>
module attributes {stable_mosaic.version = 11 : i64} {
  func.func @_fused_attention_kernel(%arg0: memref<16x32xbf16, #tpu.memory_space<vmem>>, %arg1: memref<32x112xbf16, #tpu.memory_space<vmem>>, %arg2: memref<32x32xbf16, #tpu.memory_space<vmem>>, %arg3: memref<16x48xf32, #tpu.memory_space<vmem>>, %arg4: memref<16x48xf32, #tpu.memory_space<vmem>>, %arg5: memref<2x16x8xf32, #tpu.memory_space<vmem>>, %arg6: memref<16x32xf32, #tpu.memory_space<vmem>>) attributes {dimension_semantics = [], scalar_prefetch = 0 : i64, scratch_operands = 0 : i64, tpu.core_type = #tpu.core_type<tc>} {
    %c0 = arith.constant 0 : index
    %c0_0 = arith.constant 0 : index
    %0 = vector.load %arg0[%c0, %c0_0] : memref<16x32xbf16, #tpu.memory_space<vmem>>, vector<16x32xbf16>
    %c0_1 = arith.constant 0 : index
    %c0_2 = arith.constant 0 : index
    %1 = vector.load %arg1[%c0_1, %c0_2] : memref<32x112xbf16, #tpu.memory_space<vmem>>, vector<32x112xbf16>
    %cst = arith.constant dense<0.000000e+00> : vector<16x112xf32>
    %2 = tpu.matmul %0, %1, %cst {dimension_numbers = #tpu.dot_dimension_numbers<[1], [0], [0], [1], [0, 0, 1, 1], [], []>} : vector<16x32xbf16>, vector<32x112xbf16>, vector<16x112xf32> -> vector<16x112xf32>
    %3 = vector.extract_strided_slice %2 {offsets = [0, 0], sizes = [16, 48], strides = [1, 1]} : vector<16x112xf32> to vector<16x48xf32>
    %c0_3 = arith.constant 0 : index
    %c0_4 = arith.constant 0 : index
    %4 = vector.load %arg3[%c0_3, %c0_4] : memref<16x48xf32, #tpu.memory_space<vmem>>, vector<16x48xf32>
    %5 = arith.mulf %3, %4 : vector<16x48xf32>
    %6 = vector.extract_strided_slice %2 {offsets = [0, 64], sizes = [16, 48], strides = [1, 1]} : vector<16x112xf32> to vector<16x48xf32>
    %c0_5 = arith.constant 0 : index
    %c0_6 = arith.constant 0 : index
    %7 = vector.load %arg4[%c0_5, %c0_6] : memref<16x48xf32, #tpu.memory_space<vmem>>, vector<16x48xf32>
    %8 = arith.mulf %6, %7 : vector<16x48xf32>
    %9 = arith.addf %5, %8 : vector<16x48xf32>
    %10 = vector.extract_strided_slice %2 {offsets = [0, 48], sizes = [16, 16], strides = [1, 1]} : vector<16x112xf32> to vector<16x16xf32>
    %c0_7 = arith.constant 0 : index
    %c0_8 = arith.constant 0 : index
    %11 = vector.load %arg2[%c0_7, %c0_8] : memref<32x32xbf16, #tpu.memory_space<vmem>>, vector<32x32xbf16>
    %12 = vector.extract_strided_slice %9 {offsets = [0, 0], sizes = [8, 32], strides = [1, 1]} : vector<16x48xf32> to vector<8x32xf32>
    %13 = vector.extract_strided_slice %9 {offsets = [0, 32], sizes = [8, 16], strides = [1, 1]} : vector<16x48xf32> to vector<8x16xf32>
    %14 = vector.extract_strided_slice %10 {offsets = [0, 0], sizes = [8, 16], strides = [1, 1]} : vector<16x16xf32> to vector<8x16xf32>
    %c0_9 = arith.constant 0 : index
    %c0_10 = arith.constant 0 : index
    %c0_11 = arith.constant 0 : index
    %15 = vector.load %arg5[%c0_9, %c0_10, %c0_11] : memref<2x16x8xf32, #tpu.memory_space<vmem>>, vector<1x16x8xf32>
    %16 = vector.shape_cast %15 : vector<1x16x8xf32> to vector<16x8xf32>
    %cst_12 = arith.constant 0.000000e+00 : f32
    %17 = vector.broadcast %cst_12 : f32 to vector<8x32xf32>
    %18 = vector.extract_strided_slice %13 {offsets = [0, 0], sizes = [8, 8], strides = [1, 1]} : vector<8x16xf32> to vector<8x8xf32>
    %19 = vector.extract_strided_slice %14 {offsets = [0, 0], sizes = [8, 8], strides = [1, 1]} : vector<8x16xf32> to vector<8x8xf32>
    %20 = vector.extract_strided_slice %12 {offsets = [0, 0], sizes = [8, 8], strides = [1, 1]} : vector<8x32xf32> to vector<8x8xf32>
    %21 = vector.extract_strided_slice %12 {offsets = [0, 8], sizes = [8, 8], strides = [1, 1]} : vector<8x32xf32> to vector<8x8xf32>
    %22 = tpu.concatenate %20, %21 in 0 : vector<8x8xf32>, vector<8x8xf32> -> vector<16x8xf32>
    %cst_13 = arith.constant dense<0.000000e+00> : vector<16x8xf32>
    %23 = tpu.matmul %22, %18, %cst_13 {dimension_numbers = #tpu.dot_dimension_numbers<[1], [1], [0], [0], [0, 0, 1, 0], [], []>} : vector<16x8xf32>, vector<8x8xf32>, vector<16x8xf32> -> vector<16x8xf32>
    %24 = arith.addf %23, %16 : vector<16x8xf32>
    %cst_14 = arith.constant dense<0xFF800000> : vector<16xf32>
    %25 = vector.multi_reduction <maximumf>, %24, %cst_14 [1] : vector<16x8xf32> to vector<16xf32>
    %26 = vector.shape_cast %25 : vector<16xf32> to vector<16x1xf32>
    %27 = vector.broadcast %26 : vector<16x1xf32> to vector<16x8xf32>
    %28 = arith.subf %24, %27 : vector<16x8xf32>
    %29 = math.exp %28 : vector<16x8xf32>
    %cst_15 = arith.constant dense<0.000000e+00> : vector<16xf32>
    %30 = vector.multi_reduction <add>, %29, %cst_15 [1] : vector<16x8xf32> to vector<16xf32>
    %31 = vector.shape_cast %30 : vector<16xf32> to vector<16x1xf32>
    %32 = tpu.reciprocal %31 {approx = true} : vector<16x1xf32> -> vector<16x1xf32>
    %33 = vector.broadcast %32 : vector<16x1xf32> to vector<16x8xf32>
    %34 = arith.mulf %29, %33 : vector<16x8xf32>
    %cst_16 = arith.constant dense<0.000000e+00> : vector<16x8xf32>
    %35 = tpu.matmul %34, %19, %cst_16 {dimension_numbers = #tpu.dot_dimension_numbers<[1], [0], [0], [1], [0, 0, 1, 1], [], []>} : vector<16x8xf32>, vector<8x8xf32>, vector<16x8xf32> -> vector<16x8xf32>
    %36 = arith.truncf %35 : vector<16x8xf32> to vector<16x8xbf16>
    %37 = vector.extract_strided_slice %36 {offsets = [0, 0], sizes = [8, 8], strides = [1, 1]} : vector<16x8xbf16> to vector<8x8xbf16>
    %38 = vector.extract_strided_slice %11 {offsets = [0, 0], sizes = [8, 32], strides = [1, 1]} : vector<32x32xbf16> to vector<8x32xbf16>
    %cst_17 = arith.constant dense<0.000000e+00> : vector<8x32xf32>
    %39 = tpu.matmul %37, %38, %cst_17 {dimension_numbers = #tpu.dot_dimension_numbers<[1], [0], [0], [1], [0, 0, 1, 1], [], []>} : vector<8x8xbf16>, vector<8x32xbf16>, vector<8x32xf32> -> vector<8x32xf32>
    %40 = arith.addf %17, %39 : vector<8x32xf32>
    %41 = vector.extract_strided_slice %36 {offsets = [8, 0], sizes = [8, 8], strides = [1, 1]} : vector<16x8xbf16> to vector<8x8xbf16>
    %42 = vector.extract_strided_slice %11 {offsets = [8, 0], sizes = [8, 32], strides = [1, 1]} : vector<32x32xbf16> to vector<8x32xbf16>
    %cst_18 = arith.constant dense<0.000000e+00> : vector<8x32xf32>
    %43 = tpu.matmul %41, %42, %cst_18 {dimension_numbers = #tpu.dot_dimension_numbers<[1], [0], [0], [1], [0, 0, 1, 1], [], []>} : vector<8x8xbf16>, vector<8x32xbf16>, vector<8x32xf32> -> vector<8x32xf32>
    %44 = arith.addf %40, %43 : vector<8x32xf32>
    %45 = vector.extract_strided_slice %13 {offsets = [0, 8], sizes = [8, 8], strides = [1, 1]} : vector<8x16xf32> to vector<8x8xf32>
    %46 = vector.extract_strided_slice %14 {offsets = [0, 8], sizes = [8, 8], strides = [1, 1]} : vector<8x16xf32> to vector<8x8xf32>
    %47 = vector.extract_strided_slice %12 {offsets = [0, 16], sizes = [8, 8], strides = [1, 1]} : vector<8x32xf32> to vector<8x8xf32>
    %48 = vector.extract_strided_slice %12 {offsets = [0, 24], sizes = [8, 8], strides = [1, 1]} : vector<8x32xf32> to vector<8x8xf32>
    %49 = tpu.concatenate %47, %48 in 0 : vector<8x8xf32>, vector<8x8xf32> -> vector<16x8xf32>
    %cst_19 = arith.constant dense<0.000000e+00> : vector<16x8xf32>
    %50 = tpu.matmul %49, %45, %cst_19 {dimension_numbers = #tpu.dot_dimension_numbers<[1], [1], [0], [0], [0, 0, 1, 0], [], []>} : vector<16x8xf32>, vector<8x8xf32>, vector<16x8xf32> -> vector<16x8xf32>
    %51 = arith.addf %50, %16 : vector<16x8xf32>
    %cst_20 = arith.constant dense<0xFF800000> : vector<16xf32>
    %52 = vector.multi_reduction <maximumf>, %51, %cst_20 [1] : vector<16x8xf32> to vector<16xf32>
    %53 = vector.shape_cast %52 : vector<16xf32> to vector<16x1xf32>
    %54 = vector.broadcast %53 : vector<16x1xf32> to vector<16x8xf32>
    %55 = arith.subf %51, %54 : vector<16x8xf32>
    %56 = math.exp %55 : vector<16x8xf32>
    %cst_21 = arith.constant dense<0.000000e+00> : vector<16xf32>
    %57 = vector.multi_reduction <add>, %56, %cst_21 [1] : vector<16x8xf32> to vector<16xf32>
    %58 = vector.shape_cast %57 : vector<16xf32> to vector<16x1xf32>
    %59 = tpu.reciprocal %58 {approx = true} : vector<16x1xf32> -> vector<16x1xf32>
    %60 = vector.broadcast %59 : vector<16x1xf32> to vector<16x8xf32>
    %61 = arith.mulf %56, %60 : vector<16x8xf32>
    %cst_22 = arith.constant dense<0.000000e+00> : vector<16x8xf32>
    %62 = tpu.matmul %61, %46, %cst_22 {dimension_numbers = #tpu.dot_dimension_numbers<[1], [0], [0], [1], [0, 0, 1, 1], [], []>} : vector<16x8xf32>, vector<8x8xf32>, vector<16x8xf32> -> vector<16x8xf32>
    %63 = arith.truncf %62 : vector<16x8xf32> to vector<16x8xbf16>
    %64 = vector.extract_strided_slice %63 {offsets = [0, 0], sizes = [8, 8], strides = [1, 1]} : vector<16x8xbf16> to vector<8x8xbf16>
    %65 = vector.extract_strided_slice %11 {offsets = [16, 0], sizes = [8, 32], strides = [1, 1]} : vector<32x32xbf16> to vector<8x32xbf16>
    %cst_23 = arith.constant dense<0.000000e+00> : vector<8x32xf32>
    %66 = tpu.matmul %64, %65, %cst_23 {dimension_numbers = #tpu.dot_dimension_numbers<[1], [0], [0], [1], [0, 0, 1, 1], [], []>} : vector<8x8xbf16>, vector<8x32xbf16>, vector<8x32xf32> -> vector<8x32xf32>
    %67 = arith.addf %44, %66 : vector<8x32xf32>
    %68 = vector.extract_strided_slice %63 {offsets = [8, 0], sizes = [8, 8], strides = [1, 1]} : vector<16x8xbf16> to vector<8x8xbf16>
    %69 = vector.extract_strided_slice %11 {offsets = [24, 0], sizes = [8, 32], strides = [1, 1]} : vector<32x32xbf16> to vector<8x32xbf16>
    %cst_24 = arith.constant dense<0.000000e+00> : vector<8x32xf32>
    %70 = tpu.matmul %68, %69, %cst_24 {dimension_numbers = #tpu.dot_dimension_numbers<[1], [0], [0], [1], [0, 0, 1, 1], [], []>} : vector<8x8xbf16>, vector<8x32xbf16>, vector<8x32xf32> -> vector<8x32xf32>
    %71 = arith.addf %67, %70 : vector<8x32xf32>
    %c0_25 = arith.constant 0 : index
    %c0_26 = arith.constant 0 : index
    %72 = vector.load %arg6[%c0_25, %c0_26] : memref<16x32xf32, #tpu.memory_space<vmem>>, vector<8x32xf32>
    tpu.vector_store %arg6[%c0_25, %c0_26], %71 {strides = array<i32>} : memref<16x32xf32, #tpu.memory_space<vmem>>, vector<8x32xf32>,
    %73 = vector.extract_strided_slice %9 {offsets = [8, 0], sizes = [8, 32], strides = [1, 1]} : vector<16x48xf32> to vector<8x32xf32>
    %74 = vector.extract_strided_slice %9 {offsets = [8, 32], sizes = [8, 16], strides = [1, 1]} : vector<16x48xf32> to vector<8x16xf32>
    %75 = vector.extract_strided_slice %10 {offsets = [8, 0], sizes = [8, 16], strides = [1, 1]} : vector<16x16xf32> to vector<8x16xf32>
    %c1 = arith.constant 1 : index
    %c0_27 = arith.constant 0 : index
    %c0_28 = arith.constant 0 : index
    %76 = vector.load %arg5[%c1, %c0_27, %c0_28] : memref<2x16x8xf32, #tpu.memory_space<vmem>>, vector<1x16x8xf32>
    %77 = vector.shape_cast %76 : vector<1x16x8xf32> to vector<16x8xf32>
    %cst_29 = arith.constant 0.000000e+00 : f32
    %78 = vector.broadcast %cst_29 : f32 to vector<8x32xf32>
    %79 = vector.extract_strided_slice %74 {offsets = [0, 0], sizes = [8, 8], strides = [1, 1]} : vector<8x16xf32> to vector<8x8xf32>
    %80 = vector.extract_strided_slice %75 {offsets = [0, 0], sizes = [8, 8], strides = [1, 1]} : vector<8x16xf32> to vector<8x8xf32>
    %81 = vector.extract_strided_slice %73 {offsets = [0, 0], sizes = [8, 8], strides = [1, 1]} : vector<8x32xf32> to vector<8x8xf32>
    %82 = vector.extract_strided_slice %73 {offsets = [0, 8], sizes = [8, 8], strides = [1, 1]} : vector<8x32xf32> to vector<8x8xf32>
    %83 = tpu.concatenate %81, %82 in 0 : vector<8x8xf32>, vector<8x8xf32> -> vector<16x8xf32>
    %cst_30 = arith.constant dense<0.000000e+00> : vector<16x8xf32>
    %84 = tpu.matmul %83, %79, %cst_30 {dimension_numbers = #tpu.dot_dimension_numbers<[1], [1], [0], [0], [0, 0, 1, 0], [], []>} : vector<16x8xf32>, vector<8x8xf32>, vector<16x8xf32> -> vector<16x8xf32>
    %85 = arith.addf %84, %77 : vector<16x8xf32>
    %cst_31 = arith.constant dense<0xFF800000> : vector<16xf32>
    %86 = vector.multi_reduction <maximumf>, %85, %cst_31 [1] : vector<16x8xf32> to vector<16xf32>
    %87 = vector.shape_cast %86 : vector<16xf32> to vector<16x1xf32>
    %88 = vector.broadcast %87 : vector<16x1xf32> to vector<16x8xf32>
    %89 = arith.subf %85, %88 : vector<16x8xf32>
    %90 = math.exp %89 : vector<16x8xf32>
    %cst_32 = arith.constant dense<0.000000e+00> : vector<16xf32>
    %91 = vector.multi_reduction <add>, %90, %cst_32 [1] : vector<16x8xf32> to vector<16xf32>
    %92 = vector.shape_cast %91 : vector<16xf32> to vector<16x1xf32>
    %93 = tpu.reciprocal %92 {approx = true} : vector<16x1xf32> -> vector<16x1xf32>
    %94 = vector.broadcast %93 : vector<16x1xf32> to vector<16x8xf32>
    %95 = arith.mulf %90, %94 : vector<16x8xf32>
    %cst_33 = arith.constant dense<0.000000e+00> : vector<16x8xf32>
    %96 = tpu.matmul %95, %80, %cst_33 {dimension_numbers = #tpu.dot_dimension_numbers<[1], [0], [0], [1], [0, 0, 1, 1], [], []>} : vector<16x8xf32>, vector<8x8xf32>, vector<16x8xf32> -> vector<16x8xf32>
    %97 = arith.truncf %96 : vector<16x8xf32> to vector<16x8xbf16>
    %98 = vector.extract_strided_slice %97 {offsets = [0, 0], sizes = [8, 8], strides = [1, 1]} : vector<16x8xbf16> to vector<8x8xbf16>
    %99 = vector.extract_strided_slice %11 {offsets = [0, 0], sizes = [8, 32], strides = [1, 1]} : vector<32x32xbf16> to vector<8x32xbf16>
    %cst_34 = arith.constant dense<0.000000e+00> : vector<8x32xf32>
    %100 = tpu.matmul %98, %99, %cst_34 {dimension_numbers = #tpu.dot_dimension_numbers<[1], [0], [0], [1], [0, 0, 1, 1], [], []>} : vector<8x8xbf16>, vector<8x32xbf16>, vector<8x32xf32> -> vector<8x32xf32>
    %101 = arith.addf %78, %100 : vector<8x32xf32>
    %102 = vector.extract_strided_slice %97 {offsets = [8, 0], sizes = [8, 8], strides = [1, 1]} : vector<16x8xbf16> to vector<8x8xbf16>
    %103 = vector.extract_strided_slice %11 {offsets = [8, 0], sizes = [8, 32], strides = [1, 1]} : vector<32x32xbf16> to vector<8x32xbf16>
    %cst_35 = arith.constant dense<0.000000e+00> : vector<8x32xf32>
    %104 = tpu.matmul %102, %103, %cst_35 {dimension_numbers = #tpu.dot_dimension_numbers<[1], [0], [0], [1], [0, 0, 1, 1], [], []>} : vector<8x8xbf16>, vector<8x32xbf16>, vector<8x32xf32> -> vector<8x32xf32>
    %105 = arith.addf %101, %104 : vector<8x32xf32>
    %106 = vector.extract_strided_slice %74 {offsets = [0, 8], sizes = [8, 8], strides = [1, 1]} : vector<8x16xf32> to vector<8x8xf32>
    %107 = vector.extract_strided_slice %75 {offsets = [0, 8], sizes = [8, 8], strides = [1, 1]} : vector<8x16xf32> to vector<8x8xf32>
    %108 = vector.extract_strided_slice %73 {offsets = [0, 16], sizes = [8, 8], strides = [1, 1]} : vector<8x32xf32> to vector<8x8xf32>
    %109 = vector.extract_strided_slice %73 {offsets = [0, 24], sizes = [8, 8], strides = [1, 1]} : vector<8x32xf32> to vector<8x8xf32>
    %110 = tpu.concatenate %108, %109 in 0 : vector<8x8xf32>, vector<8x8xf32> -> vector<16x8xf32>
    %cst_36 = arith.constant dense<0.000000e+00> : vector<16x8xf32>
    %111 = tpu.matmul %110, %106, %cst_36 {dimension_numbers = #tpu.dot_dimension_numbers<[1], [1], [0], [0], [0, 0, 1, 0], [], []>} : vector<16x8xf32>, vector<8x8xf32>, vector<16x8xf32> -> vector<16x8xf32>
    %112 = arith.addf %111, %77 : vector<16x8xf32>
    %cst_37 = arith.constant dense<0xFF800000> : vector<16xf32>
    %113 = vector.multi_reduction <maximumf>, %112, %cst_37 [1] : vector<16x8xf32> to vector<16xf32>
    %114 = vector.shape_cast %113 : vector<16xf32> to vector<16x1xf32>
    %115 = vector.broadcast %114 : vector<16x1xf32> to vector<16x8xf32>
    %116 = arith.subf %112, %115 : vector<16x8xf32>
    %117 = math.exp %116 : vector<16x8xf32>
    %cst_38 = arith.constant dense<0.000000e+00> : vector<16xf32>
    %118 = vector.multi_reduction <add>, %117, %cst_38 [1] : vector<16x8xf32> to vector<16xf32>
    %119 = vector.shape_cast %118 : vector<16xf32> to vector<16x1xf32>
    %120 = tpu.reciprocal %119 {approx = true} : vector<16x1xf32> -> vector<16x1xf32>
    %121 = vector.broadcast %120 : vector<16x1xf32> to vector<16x8xf32>
    %122 = arith.mulf %117, %121 : vector<16x8xf32>
    %cst_39 = arith.constant dense<0.000000e+00> : vector<16x8xf32>
    %123 = tpu.matmul %122, %107, %cst_39 {dimension_numbers = #tpu.dot_dimension_numbers<[1], [0], [0], [1], [0, 0, 1, 1], [], []>} : vector<16x8xf32>, vector<8x8xf32>, vector<16x8xf32> -> vector<16x8xf32>
    %124 = arith.truncf %123 : vector<16x8xf32> to vector<16x8xbf16>
    %125 = vector.extract_strided_slice %124 {offsets = [0, 0], sizes = [8, 8], strides = [1, 1]} : vector<16x8xbf16> to vector<8x8xbf16>
    %126 = vector.extract_strided_slice %11 {offsets = [16, 0], sizes = [8, 32], strides = [1, 1]} : vector<32x32xbf16> to vector<8x32xbf16>
    %cst_40 = arith.constant dense<0.000000e+00> : vector<8x32xf32>
    %127 = tpu.matmul %125, %126, %cst_40 {dimension_numbers = #tpu.dot_dimension_numbers<[1], [0], [0], [1], [0, 0, 1, 1], [], []>} : vector<8x8xbf16>, vector<8x32xbf16>, vector<8x32xf32> -> vector<8x32xf32>
    %128 = arith.addf %105, %127 : vector<8x32xf32>
    %129 = vector.extract_strided_slice %124 {offsets = [8, 0], sizes = [8, 8], strides = [1, 1]} : vector<16x8xbf16> to vector<8x8xbf16>
    %130 = vector.extract_strided_slice %11 {offsets = [24, 0], sizes = [8, 32], strides = [1, 1]} : vector<32x32xbf16> to vector<8x32xbf16>
    %cst_41 = arith.constant dense<0.000000e+00> : vector<8x32xf32>
    %131 = tpu.matmul %129, %130, %cst_41 {dimension_numbers = #tpu.dot_dimension_numbers<[1], [0], [0], [1], [0, 0, 1, 1], [], []>} : vector<8x8xbf16>, vector<8x32xbf16>, vector<8x32xf32> -> vector<8x32xf32>
    %132 = arith.addf %128, %131 : vector<8x32xf32>
    %c8 = arith.constant 8 : index
    %c0_42 = arith.constant 0 : index
    %133 = vector.load %arg6[%c8, %c0_42] : memref<16x32xf32, #tpu.memory_space<vmem>>, vector<8x32xf32>
    tpu.vector_store %arg6[%c8, %c0_42], %132 {strides = array<i32>} : memref<16x32xf32, #tpu.memory_space<vmem>>, vector<8x32xf32>,
    return
  }
}

</mosaic_0001>

<bundles_post_ra>
// kernel: tpu_custom_call.1
= control target key start
LH: loop header
LB: loop body
LE: loop exit
PB: predicated region body
PF: predicated region fallthrough
CT: control target
= control target key end

     0   :  { %11 = vsyncpa [#allocation3], 0  ;;  %s1908_s0 = inlined_call_operand.hbm [shape: bf16[16,32], index: 0, kind: input, shape index: {}]   ;;  %s1909_s1 = inlined_call_operand.vmem [shape: bf16[32,112], index: 1, kind: input, shape index: {}]   ;;  %s1910_s2 = inlined_call_operand.vmem [shape: bf16[32,32], index: 2, kind: input, shape index: {}]   ;;  %s1911_s3 = inlined_call_operand.vmem [shape: f32[16,48], index: 3, kind: input, shape index: {}]   ;;  %s1912_s4 = inlined_call_operand.hbm [shape: f32[16,48], index: 4, kind: input, shape index: {}]   ;;  %s1913_s5 = inlined_call_operand.vmem [shape: f32[2,16,8], index: 5, kind: input, shape index: {}]   ;;  %s1914_s6 = inlined_call_operand.hbm [shape: f32[16,32], index: 6, kind: output, shape index: {}]  }
   0x1   :  { %12 = vsyncpa [#allocation6], 0 }
   0x2   :  { %13 = vsyncpa [#allocation4], 0  ;;  %s1641_s21 = smov [#allocation2]   ;;  %s1569_s25 = scalar_lea.hbm %s1908_s0, 128 }
   0x3   :  { %s19_s22 = sshll.u32 %s1641_s21, 4  ;;  %p1570_p0 = scmp.ne.s32.totalorder %s1908_s0, %s1569_s25  ;;  %s20_s22 = int_to_ptr.vmem [resolvable:$true] %s19_s22 }
   0x4   :  { %p1573_p1 = scmp.lt.u32.totalorder %s1569_s25, %s1908_s0 }
   0x6   :  { %p1575_p2 = pnand %p1573_p1, %p1570_p0 }
   0x8   :  { %1578 = shalt.err (!%p1575_p2)
}
   0x9   :  { %s1579_s30 = scalar_lea.vmem %s20_s22, 128  ;;  %p1584_p4 = scmp.lt.s32.totalorder %s20_s22, %s20_s22 }
   0xa   :  { %p1580_p3 = scmp.ne.s32.totalorder %s20_s22, %s1579_s30  ;;  %p1585_p5 = scmp.lt.s32.totalorder %s1579_s30, %s1579_s30 }
   0xc   :  { %p1586_p6 = por %p1585_p5, %p1584_p4 }
   0xe   :  { %p1587_p7 = pnand %p1586_p6, %p1580_p3 }
  0x10   :  { %1590 = shalt.err (!%p1587_p7)
}
  0x11   :  { %s1642_s7 = smov 64   ;;  %s1643_s8 = smov 4  }
  0x12   :  { %25 = dma.hbm_to_vmem [thread:$0]  %s1908_s0, 128, %s20_s22, [#allocation3], %s1642_s7, %s1642_s7, %s1643_s8  }
  0x13   :  { %s1644_s11 = smov [#allocation5]   ;;  %s1591_s15 = scalar_lea.hbm %s1912_s4, 256 }
  0x14   :  { %s37_s12 = sshll.u32 %s1644_s11, 4  ;;  %p1592_p8 = scmp.ne.s32.totalorder %s1912_s4, %s1591_s15  ;;  %s38_s12 = int_to_ptr.vmem [resolvable:$true] %s37_s12 }
  0x15   :  { %p1595_p9 = scmp.lt.u32.totalorder %s1591_s15, %s1912_s4 }
  0x17   :  { %p1597_p10 = pnand %p1595_p9, %p1592_p8 }
  0x19   :  { %1600 = shalt.err (!%p1597_p10)
}
  0x1a   :  { %s1601_s20 = scalar_lea.vmem %s38_s12, 256  ;;  %p1606_p12 = scmp.lt.s32.totalorder %s38_s12, %s38_s12 }
  0x1b   :  { %p1602_p11 = scmp.ne.s32.totalorder %s38_s12, %s1601_s20  ;;  %p1607_p13 = scmp.lt.s32.totalorder %s1601_s20, %s1601_s20 }
  0x1d   :  { %p1608_p0 = por %p1607_p13, %p1606_p12 }
  0x1f   :  { %p1609_p1 = pnand %p1608_p0, %p1602_p11 }
  0x21   :  { %1612 = shalt.err (!%p1609_p1)
}
  0x22   :  { %s1645_s0 = smov 128   ;;  %s1646_s21 = smov 8  }
  0x23   :  { %43 = dma.hbm_to_vmem [thread:$0]  %s1912_s4, 256, %s38_s12, [#allocation6], %s1645_s0, %s1645_s0, %s1646_s21  }
  0x24   :  { %1635 = dma.done.wait [#allocation3], 128  }
  0x25   :  { %1636 = vsyncadd [#allocation3], 4294967168 }
  0x26   :  { %1637 = dma.done.wait [#allocation6], 256  }
  0x27   :  { %1638 = vsyncadd [#allocation6], 4294967040  ;;  %v1647_v0 = vmov 0.0   ;;  %vm1648_vm0 = vmmov 0   ;;  %v1534_v1 = vld [vmem:[%s1909_s1] sm:$0xff]   ;;  %v1535_v2 = vld [vmem:[%s1909_s1 + $0x8] sm:$0xff]  }
  0x28   :  { %1399 = vmatprep.subr.bf16.mxu1 %v1647_v0  ;;  %1403 = vmatprep.mubr.msk.bf16.mxu1 %vm1648_vm0, %v1647_v0  ;;  %v125_v3 = vld [vmem:[#allocation5] sm:$0xff]  ;;  %v1536_v4 = vld [vmem:[#allocation2] sm:$0xff]   ;;  %vm76_vm1 = vcmask 261120   ;;  %vm158_vm2 = vcmask 64512   ;;  %s1649_s28 = smov 96   ;;  %s1650_s29 = smov 120  }
  0x29   :  { %1400 = vmatpush3.bf16.msra.mxu1 %v1534_v1  ;;  %129 = vrot.lane.b32.xlu0 %v125_v3, %s1642_s7  ;;  %v121_v11 = vld [vmem:[%s1911_s3] sm:$0xff]  ;;  %v1754_v17 = vld [vmem:[%s1913_s5 + $0x8] sm:$0xff]  ;;  %s1651_s11 = smov 80   ;;  %s1652_s12 = smov 112   ;;  %v126_v36 = vld [vmem:[#allocation5 + $0x8] sm:$0xff]  ;;  %vm353_vm3 = vcmask 1043456  }
  0x2a   :  { %1401 = vmatprep.subr.bf16.mxu1 %v1647_v0  ;;  %v1759_v18 = vld [vmem:[%s1913_s5] sm:$0xff]  ;;  %s1653_s13 = smov 88   ;;  %v122_v63 = vld [vmem:[%s1911_s3 + $0x8] sm:$0xff]  ;;  %s1654_s3 = smov 72  }
  0x2b   :  { %v148_v46 = vld [vmem:[%s1910_s2 + $0x4] sm:$0xf]  ;;  %v147_v50 = vld [vmem:[%s1910_s2] sm:$0xf] }
  0x2c   :  { %v1783_v47 = vsel %vm353_vm3, %v148_v46, 0  ;;  %v1791_v54 = vsel %vm353_vm3, %v147_v50, 0 }
  0x2d   :  { %1402 = vmatpush3.bf16.msra.mxu1 %v1535_v2 }
  0x30   :  { %1404 = vmatmul.mubr.msk.bf16.vlgmr.msra.gmra.mrb[0].mxu1 %vm76_vm1, %v1536_v4 }
  0x9b   :  { %v130_v5 = vpop.permute.xlu0 %129 }
 0x103   :  { %v1732_v6 = vpop.f32.mrb[0].mxu1 }
 0x104   :  { %v1405_v7 = vpop.f32.mrb[1].mxu1  ;;  %v135_v8 = vmul.f32 %v130_v5, %v1732_v6  ;;  %v123_v12 = vmul.f32 %v121_v11, %v1732_v6 }
 0x105   :  { %v1735_v9 = vpop.f32.mrb[2].mxu1 }
 0x106   :  { %139 = vrot.lane.b32.xlu0 %v135_v8, %s1642_s7  ;;  %v1406_v10 = vpop.f32.mrb[3].mxu1  ;;  %v124_v5 = vmul.f32 %v122_v63, %v1735_v9 }
 0x178   :  { %v140_v13 = vpop.permute.xlu0 %139 }
 0x179   :  { %v145_v14 = vadd.f32 %v140_v13, %v123_v12 }
 0x17b   :  { %156 = vrot.lane.b32.xlu1 %v145_v14, %s1649_s28  ;;  %1409 = vmatprep.mubr.msk.f32.mxu1 %vm158_vm2, %v145_v14 }
 0x17f   :  { %154 = vrot.lane.b32.xlu1 %v145_v14, %s1650_s29 }
 0x1ed   :  { %v157_v15 = vpop.permute.xlu1 %156 }
 0x1ee   :  { %1407 = vmatprep.subr.msk.mxu1 %vm158_vm2, %v157_v15 }
 0x1ef   :  { %1408 = vmatpush3.xpose.msk.msra.mxu1 %vm158_vm2, %v157_v15 }
 0x1f0   :  { %1417 = vmatprep.subr.bf16.mxu1 %v1647_v0 }
 0x1f1   :  { %v155_v16 = vpop.permute.xlu1 %154 }
 0x1f2   :  { %1410 = vmatmul.mubr.msk.f32.vlgmr.msra.gmra.mrb[4].mxu1 %vm158_vm2, %v155_v16 }
 0x1f3   :  { %1419 = vmatprep.mubr.msk.bf16.mxu1 %vm1648_vm0, %v1647_v0  ;;  %1418 = vmatpush3.bf16.msra.mxu1 %v1783_v47 }
 0x1f4   :  { %1423 = vmatprep.subr.bf16.mxu1 %v1647_v0 }
 0x2c5   :  { %v1411_v19 = vpop.f32.mrb[4].mxu1 }
 0x2c6   :  { %v237_v20 = vadd.f32 %v1411_v19, %v1754_v17  ;;  %v231_v21 = vpop.f32.mrb[5].mxu1 }
 0x2c7   :  { %v232_v22 = vadd.f32 %v231_v21, %v1759_v18 }
 0x2c8   :  { %v243_v23 = vsel %vm158_vm2, %v237_v20, -inf }
 0x2c9   :  { %244 = vmax.xlane.f32.xlu1 %v243_v23  ;;  %v240_v24 = vsel %vm158_vm2, %v232_v22, -inf }
 0x2ca   :  { %241 = vmax.xlane.f32.xlu0 %v240_v24 }
 0x2da   :  { %263 = vrot.lane.b32.xlu1 %v1732_v6, %s1651_s11 }
 0x2de   :  { %443 = vrot.lane.b32.xlu1 %v145_v14, %s1652_s12 }
 0x2e2   :  { %445 = vrot.lane.b32.xlu1 %v155_v16, %s1652_s12 }
 0x356   :  { %v245_v25 = vpop.xlane.xlu1 %244 }
 0x357   :  { %v247_v26 = vsub.f32 %v237_v20, %v245_v25  ;;  %v242_v27 = vpop.xlane.xlu0 %241  ;;  %v150_v25 = vld [vmem:[%s1910_s2 + $0xc] sm:$0xf] }
 0x358   :  { %v246_v28 = vsub.f32 %v232_v22, %v242_v27 }
 0x359   :  { %v250_v29 = vmul.f32 1.442695, %v247_v26 }
 0x35a   :  { %v248_v30 = vmul.f32 1.442695, %v246_v28  ;;  %v264_v31 = vpop.permute.xlu1 %263 }
 0x35b   :  { %1537 = vpow2.f32 %v250_v29  ;;  %1412 = vmatprep.subr.mxu0 %v264_v31  ;;  %v1838_v29 = vsel %vm353_vm3, %v150_v25, 0 }
 0x35c   :  { %1413 = vmatpush3.msra.mxu0 %v264_v31  ;;  %1539 = vpow2.f32 %v248_v30  ;;  %v1341_v30 = vld [vmem:[%s1913_s5 + $0x18] sm:$0xff]  ;;  %v1340_v31 = vld [vmem:[%s1913_s5 + $0x10] sm:$0xff] }
 0x35e   :  { %v444_v42 = vpop.permute.xlu1 %443 }
 0x362   :  { %v446_v45 = vpop.permute.xlu1 %445 }
 0x365   :  { %v1538_v32 = vpop.eup %1537 }
 0x366   :  { %v255_v33 = vsel %vm158_vm2, %v1538_v32, 0.0  ;;  %v1540_v34 = vpop.eup %1539 }
 0x367   :  { %256 = vadd.xlane.f32.xlu0 %v255_v33  ;;  %v252_v35 = vsel %vm158_vm2, %v1540_v34, 0.0 }
 0x36b   :  { %253 = vadd.xlane.f32.xlu0 %v252_v35 }
 0x381   :  { %447 = vrot.lane.b32.xlu0 %v145_v14, %s1653_s13 }
 0x385   :  { %131 = vrot.lane.b32.xlu0 %v126_v36, %s1642_s7 }
 0x3f4   :  { %v257_v37 = vpop.xlane.xlu0 %256 }
 0x3f5   :  { %1541 = vrcp.f32 %v257_v37 }
 0x3f8   :  { %v254_v38 = vpop.xlane.xlu0 %253 }
 0x3f9   :  { %1543 = vrcp.f32 %v254_v38 }
 0x3fc   :  { %v448_v39 = vpop.permute.xlu0 %447 }
 0x3fd   :  { %1429 = vmatprep.subr.msk.mxu0 %vm158_vm2, %v448_v39 }
 0x3ff   :  { %v1542_v40 = vpop.eup %1541 }
 0x400   :  { %v261_v44 = vmul.f32 %v1542_v40, %v1538_v32  ;;  %v132_v60 = vpop.permute.xlu0 %131 }
 0x401   :  { %v136_v61 = vmul.f32 %v132_v60, %v1735_v9 }
 0x403   :  { %v1544_v41 = vpop.eup %1543 }
 0x404   :  { %v260_v43 = vmul.f32 %v1544_v41, %v1540_v34 }
 0x406   :  { %1414 = vmatprep.mubr.msk.f32.mxu0 %vm158_vm2, %v260_v43 }
 0x407   :  { %1415 = vmatmul.mubr.msk.f32.vlgmr.msra.gmra.mrb[0].mxu0 %vm158_vm2, %v261_v44 }
 0x408   :  { %1430 = vmatpush3.xpose.msk.msra.mxu0 %vm158_vm2, %v448_v39  ;;  %1431 = vmatprep.mubr.msk.f32.mxu0 %vm158_vm2, %v444_v42 }
 0x40b   :  { %1432 = vmatmul.mubr.msk.f32.vlgmr.msra.gmra.mrb[2].mxu0 %vm158_vm2, %v446_v45 }
 0x4da   :  { %v1416_v48 = vpop.f32.mrb[0].mxu0 }
 0x4db   :  { %v338_v49 = vpop.f32.mrb[1].mxu0 }
 0x4dc   :  { %v347_v51 = vpack.c.bf16 %v1416_v48, %v338_v49 }
 0x4de   :  { %v349_v52 = vrot.slane %v347_v51, 4  ;;  %v1433_v53 = vpop.f32.mrb[2].mxu0 }
 0x4df   :  { %v527_v55 = vadd.f32 %v1433_v53, %v1754_v17  ;;  %v521_v56 = vpop.f32.mrb[3].mxu0 }
 0x4e0   :  { %v522_v57 = vadd.f32 %v521_v56, %v1759_v18  ;;  %1420 = vmatmul.mubr.msk.bf16.vlgmr.msra.gmra.mrb[8].mxu1 %vm158_vm2, %v349_v52 }
 0x4e1   :  { %v533_v58 = vsel %vm158_vm2, %v527_v55, -inf  ;;  %1424 = vmatpush3.bf16.msra.mxu1 %v1791_v54  ;;  %1425 = vmatprep.mubr.msk.bf16.mxu1 %vm1648_vm0, %v1647_v0 }
 0x4e2   :  { %534 = vmax.xlane.f32.xlu0 %v533_v58  ;;  %v530_v59 = vsel %vm158_vm2, %v522_v57, -inf  ;;  %1439 = vmatprep.subr.bf16.mxu1 %v1647_v0 }
 0x4e3   :  { %531 = vmax.xlane.f32.xlu1 %v530_v59 }
 0x4ec   :  { %1426 = vmatmul.mubr.msk.bf16.vlgmr.msra.gmra.mrb[8].mxu1 %vm158_vm2, %v347_v51 }
 0x4ed   :  { %1441 = vmatprep.mubr.msk.bf16.mxu1 %vm1648_vm0, %v1647_v0 }
 0x4f8   :  { %141 = vrot.lane.b32.xlu0 %v136_v61, %s1642_s7 }
 0x56f   :  { %v535_v62 = vpop.xlane.xlu0 %534 }
 0x570   :  { %v537_v1 = vsub.f32 %v527_v55, %v535_v62  ;;  %v532_v2 = vpop.xlane.xlu1 %531 }
 0x571   :  { %v536_v3 = vsub.f32 %v522_v57, %v532_v2 }
 0x572   :  { %v540_v4 = vmul.f32 1.442695, %v537_v1 }
 0x573   :  { %v538_v7 = vmul.f32 1.442695, %v536_v3  ;;  %v142_v8 = vpop.permute.xlu0 %141 }
 0x574   :  { %1545 = vpow2.f32 %v540_v4  ;;  %v146_v10 = vadd.f32 %v142_v8, %v124_v5 }
 0x575   :  { %1547 = vpow2.f32 %v538_v7 }
 0x576   :  { %740 = vrot.lane.b32.xlu0 %v146_v10, %s1649_s28 }
 0x57a   :  { %738 = vrot.lane.b32.xlu0 %v146_v10, %s1650_s29 }
 0x57e   :  { %v1546_v11 = vpop.eup %1545  ;;  %1019 = vrot.lane.b32.xlu0 %v146_v10, %s1652_s12 }
 0x57f   :  { %v545_v12 = vsel %vm158_vm2, %v1546_v11, 0.0  ;;  %v1548_v13 = vpop.eup %1547 }
 0x580   :  { %546 = vadd.xlane.f32.xlu1 %v545_v12  ;;  %v542_v14 = vsel %vm158_vm2, %v1548_v13, 0.0 }
 0x584   :  { %543 = vadd.xlane.f32.xlu1 %v542_v14 }
 0x595   :  { %552 = vrot.lane.b32.xlu1 %v1732_v6, %s1654_s3  ;;  %v149_v6 = vld [vmem:[%s1910_s2 + $0x8] sm:$0xf]  ;;  %s1655_s2 = smov [#allocation7]  }
 0x596   :  { %v1830_v24 = vsel %vm353_vm3, %v149_v6, 0  ;;  %s1309_s5 = sshll.u32 %s1655_s2, 4  ;;  %s1310_s5 = int_to_ptr.vmem [resolvable:$true] %s1309_s5 }
 0x597   :  { %1440 = vmatpush3.bf16.msra.mxu1 %v1830_v24  ;;  %s1613_s1 = scalar_lea.vmem %s1310_s5, 256  ;;  %p1618_p3 = scmp.lt.s32.totalorder %s1310_s5, %s1310_s5 }
 0x598   :  { %1445 = vmatprep.subr.bf16.mxu1 %v1647_v0  ;;  %p1614_p2 = scmp.ne.s32.totalorder %s1310_s5, %s1613_s1  ;;  %p1619_p4 = scmp.lt.s32.totalorder %s1613_s1, %s1613_s1 }
 0x599   :  { %1023 = vrot.lane.b32.xlu1 %v146_v10, %s1653_s13 }
 0x59a   :  { %p1620_p5 = por %p1619_p4, %p1618_p3 }
 0x59c   :  { %p1621_p6 = pnand %p1620_p5, %p1614_p2 }
 0x5e8   :  { %v741_v15 = vpop.permute.xlu0 %740 }
 0x5ec   :  { %v739_v16 = vpop.permute.xlu0 %738 }
 0x5ed   :  { %1021 = vrot.lane.b32.xlu1 %v739_v16, %s1652_s12 }
 0x5f0   :  { %v1020_v40 = vpop.permute.xlu0 %1019 }
 0x60d   :  { %v547_v17 = vpop.xlane.xlu1 %546 }
 0x60e   :  { %1549 = vrcp.f32 %v547_v17 }
 0x611   :  { %v544_v18 = vpop.xlane.xlu1 %543 }
 0x612   :  { %1551 = vrcp.f32 %v544_v18 }
 0x615   :  { %v553_v19 = vpop.permute.xlu1 %552 }
 0x616   :  { %1434 = vmatprep.subr.mxu0 %v553_v19 }
 0x617   :  { %1435 = vmatpush3.msra.mxu0 %v553_v19 }
 0x618   :  { %1451 = vmatprep.subr.msk.mxu0 %vm158_vm2, %v741_v15  ;;  %v1550_v20 = vpop.eup %1549 }
 0x619   :  { %v551_v23 = vmul.f32 %v1550_v20, %v1546_v11  ;;  %v1024_v33 = vpop.permute.xlu1 %1023 }
 0x61c   :  { %v1552_v21 = vpop.eup %1551 }
 0x61d   :  { %v550_v22 = vmul.f32 %v1552_v21, %v1548_v13 }
 0x61f   :  { %1436 = vmatprep.mubr.msk.f32.mxu0 %vm158_vm2, %v550_v22 }
 0x620   :  { %1437 = vmatmul.mubr.msk.f32.vlgmr.msra.gmra.mrb[4].mxu0 %vm158_vm2, %v551_v23 }
 0x621   :  { %1452 = vmatpush3.xpose.msk.msra.mxu0 %vm158_vm2, %v741_v15  ;;  %1453 = vmatprep.mubr.msk.f32.mxu0 %vm158_vm2, %v146_v10 }
 0x624   :  { %1454 = vmatmul.mubr.msk.f32.vlgmr.msra.gmra.mrb[6].mxu0 %vm158_vm2, %v739_v16 }
 0x65f   :  { %v1022_v41 = vpop.permute.xlu1 %1021 }
 0x6f3   :  { %v1438_v26 = vpop.f32.mrb[4].mxu0 }
 0x6f4   :  { %v627_v27 = vpop.f32.mrb[5].mxu0 }
 0x6f5   :  { %v636_v28 = vpack.c.bf16 %v1438_v26, %v627_v27 }
 0x6f7   :  { %1442 = vmatmul.mubr.msk.bf16.vlgmr.msra.gmra.mrb[8].mxu1 %vm158_vm2, %v636_v28  ;;  %v1455_v32 = vpop.f32.mrb[6].mxu0  ;;  %v685_v39 = vrot.slane %v636_v28, 4 }
 0x6f8   :  { %1446 = vmatpush3.bf16.msra.mxu1 %v1838_v29  ;;  %v820_v34 = vadd.f32 %v1455_v32, %v1341_v30  ;;  %v814_v35 = vpop.f32.mrb[7].mxu0  ;;  %1447 = vmatprep.mubr.msk.bf16.mxu1 %vm1648_vm0, %v1647_v0 }
 0x6f9   :  { %v815_v36 = vadd.f32 %v1340_v31, %v814_v35  ;;  %1473 = vmatprep.subr.msk.mxu1 %vm158_vm2, %v1024_v33 }
 0x6fa   :  { %v826_v37 = vsel %vm158_vm2, %v820_v34, -inf }
 0x6fb   :  { %827 = vmax.xlane.f32.xlu1 %v826_v37  ;;  %v823_v38 = vsel %vm158_vm2, %v815_v36, -inf }
 0x6fc   :  { %824 = vmax.xlane.f32.xlu0 %v823_v38 }
 0x703   :  { %1448 = vmatmul.mubr.msk.bf16.vlgmr.msra.gmra.mrb[8].mxu1 %vm158_vm2, %v685_v39 }
 0x704   :  { %1474 = vmatpush3.xpose.msk.msra.mxu1 %vm158_vm2, %v1024_v33  ;;  %1475 = vmatprep.mubr.msk.f32.mxu1 %vm158_vm2, %v1020_v40 }
 0x70b   :  { %1476 = vmatmul.mubr.msk.f32.vlgmr.msra.gmra.mrb[6].mxu1 %vm158_vm2, %v1022_v41 }
 0x70c   :  { %846 = vrot.lane.b32.xlu1 %v1735_v9, %s1651_s11 }
 0x710   :  { %1128 = vrot.lane.b32.xlu1 %v1735_v9, %s1654_s3 }
 0x788   :  { %v828_v42 = vpop.xlane.xlu1 %827 }
 0x789   :  { %v830_v43 = vsub.f32 %v820_v34, %v828_v42  ;;  %v825_v44 = vpop.xlane.xlu0 %824 }
 0x78a   :  { %v829_v45 = vsub.f32 %v815_v36, %v825_v44 }
 0x78b   :  { %v833_v46 = vmul.f32 1.442695, %v830_v43 }
 0x78c   :  { %v831_v48 = vmul.f32 1.442695, %v829_v45  ;;  %v847_v49 = vpop.permute.xlu1 %846 }
 0x78d   :  { %1456 = vmatprep.subr.mxu0 %v847_v49 }
 0x78e   :  { %1553 = vpow2.f32 %v831_v48  ;;  %1457 = vmatpush3.msra.mxu0 %v847_v49 }
 0x78f   :  { %1461 = vmatprep.subr.bf16.mxu0 %v1647_v0  ;;  %1555 = vpow2.f32 %v833_v46 }
 0x790   :  { %v1129_v23 = vpop.permute.xlu1 %1128 }
 0x798   :  { %v1554_v50 = vpop.eup %1553 }
 0x799   :  { %v835_v51 = vsel %vm158_vm2, %v1554_v50, 0.0  ;;  %v1556_v52 = vpop.eup %1555 }
 0x79a   :  { %836 = vadd.xlane.f32.xlu0 %v835_v51  ;;  %v838_v9 = vsel %vm158_vm2, %v1556_v52, 0.0 }
 0x79e   :  { %839 = vadd.xlane.f32.xlu0 %v838_v9 }
 0x7d6   :  { %v726_v53 = vpop.f32.mrb[8].mxu1 }
 0x7d7   :  { %733 = vst.msk [vmem:[#allocation7] sm:$0xff] %vm76_vm1, %v726_v53  ;;  %v1449_v55 = vpop.f32.mrb[9].mxu1 }
 0x7d8   :  { %v729_v56 = vpop.f32.mrb[10].mxu1 }
 0x7d9   :  { %v1450_v57 = vpop.f32.mrb[11].mxu1 }
 0x7de   :  { %v1477_v58 = vpop.f32.mrb[6].mxu1 }
 0x7df   :  { %v1097_v59 = vpop.f32.mrb[7].mxu1  ;;  %v1103_v61 = vadd.f32 %v1477_v58, %v1341_v30 }
 0x7e0   :  { %v1098_v60 = vadd.f32 %v1340_v31, %v1097_v59 }
 0x7e1   :  { %v1109_v63 = vsel %vm158_vm2, %v1103_v61, -inf }
 0x7e2   :  { %v1106_v62 = vsel %vm158_vm2, %v1098_v60, -inf }
 0x7e3   :  { %1107 = vmax.xlane.f32.xlu0 %v1106_v62 }
 0x7e7   :  { %1110 = vmax.xlane.f32.xlu0 %v1109_v63 }
 0x827   :  { %v837_v1 = vpop.xlane.xlu0 %836 }
 0x828   :  { %1557 = vrcp.f32 %v837_v1 }
 0x82b   :  { %v840_v2 = vpop.xlane.xlu0 %839 }
 0x82c   :  { %1559 = vrcp.f32 %v840_v2 }
 0x832   :  { %v1558_v3 = vpop.eup %1557 }
 0x833   :  { %v843_v4 = vmul.f32 %v1558_v3, %v1554_v50 }
 0x835   :  { %1458 = vmatprep.mubr.msk.f32.mxu0 %vm158_vm2, %v843_v4 }
 0x836   :  { %v1560_v5 = vpop.eup %1559 }
 0x837   :  { %v844_v7 = vmul.f32 %v1560_v5, %v1556_v52 }
 0x839   :  { %1459 = vmatmul.mubr.msk.f32.vlgmr.msra.gmra.mrb[8].mxu0 %vm158_vm2, %v844_v7 }
 0x83a   :  { %1462 = vmatpush3.bf16.msra.mxu0 %v1783_v47  ;;  %1463 = vmatprep.mubr.msk.bf16.mxu0 %vm1648_vm0, %v1647_v0 }
 0x83b   :  { %1467 = vmatprep.subr.bf16.mxu0 %v1647_v0 }
 0x870   :  { %v1108_v8 = vpop.xlane.xlu0 %1107 }
 0x871   :  { %v1112_v10 = vsub.f32 %v1098_v60, %v1108_v8 }
 0x873   :  { %v1114_v11 = vmul.f32 1.442695, %v1112_v10 }
 0x874   :  { %v1111_v12 = vpop.xlane.xlu0 %1110 }
 0x875   :  { %1561 = vpow2.f32 %v1114_v11  ;;  %v1113_v13 = vsub.f32 %v1103_v61, %v1111_v12 }
 0x877   :  { %v1116_v14 = vmul.f32 1.442695, %v1113_v13 }
 0x879   :  { %1563 = vpow2.f32 %v1116_v14 }
 0x87f   :  { %v1562_v15 = vpop.eup %1561 }
 0x880   :  { %v1118_v16 = vsel %vm158_vm2, %v1562_v15, 0.0 }
 0x881   :  { %1119 = vadd.xlane.f32.xlu0 %v1118_v16 }
 0x883   :  { %v1564_v17 = vpop.eup %1563 }
 0x884   :  { %v1121_v47 = vsel %vm158_vm2, %v1564_v17, 0.0 }
 0x885   :  { %1122 = vadd.xlane.f32.xlu0 %v1121_v47 }
 0x90c   :  { %v1460_v18 = vpop.f32.mrb[8].mxu0 }
 0x90d   :  { %v921_v19 = vpop.f32.mrb[9].mxu0 }
 0x90e   :  { %v930_v20 = vpack.c.bf16 %v1460_v18, %v921_v19  ;;  %v1120_v21 = vpop.xlane.xlu0 %1119 }
 0x90f   :  { %1565 = vrcp.f32 %v1120_v21 }
 0x910   :  { %v932_v22 = vrot.slane %v930_v20, 4 }
 0x912   :  { %1464 = vmatmul.mubr.msk.bf16.vlgmr.msra.gmra.mrb[12].mxu0 %vm158_vm2, %v932_v22  ;;  %v1123_v6 = vpop.xlane.xlu0 %1122 }
 0x913   :  { %1468 = vmatpush3.bf16.msra.mxu0 %v1791_v54  ;;  %1469 = vmatprep.mubr.msk.bf16.mxu0 %vm1648_vm0, %v1647_v0  ;;  %1567 = vrcp.f32 %v1123_v6 }
 0x914   :  { %1478 = vmatprep.subr.mxu0 %v1129_v23 }
 0x919   :  { %v1566_v25 = vpop.eup %1565 }
 0x91a   :  { %v1126_v26 = vmul.f32 %v1566_v25, %v1562_v15 }
 0x91d   :  { %v1568_v27 = vpop.eup %1567 }
 0x91e   :  { %1470 = vmatmul.mubr.msk.bf16.vlgmr.msra.gmra.mrb[12].mxu0 %vm158_vm2, %v930_v20  ;;  %v1127_v28 = vmul.f32 %v1568_v27, %v1564_v17 }
 0x91f   :  { %1479 = vmatpush3.msra.mxu0 %v1129_v23  ;;  %1480 = vmatprep.mubr.msk.f32.mxu0 %vm158_vm2, %v1126_v26 }
 0x920   :  { %1483 = vmatprep.subr.bf16.mxu0 %v1647_v0 }
 0x926   :  { %1481 = vmatmul.mubr.msk.f32.vlgmr.msra.gmra.mrb[10].mxu0 %vm158_vm2, %v1127_v28 }
 0x927   :  { %1484 = vmatpush3.bf16.msra.mxu0 %v1830_v24  ;;  %1485 = vmatprep.mubr.msk.bf16.mxu0 %vm1648_vm0, %v1647_v0 }
 0x928   :  { %1489 = vmatprep.subr.bf16.mxu0 %v1647_v0 }
 0x9f9   :  { %v1482_v54 = vpop.f32.mrb[10].mxu0 }
 0x9fa   :  { %v1203_v30 = vpop.f32.mrb[11].mxu0 }
 0x9fb   :  { %v1212_v31 = vpack.c.bf16 %v1482_v54, %v1203_v30 }
 0x9fd   :  { %1486 = vmatmul.mubr.msk.bf16.vlgmr.msra.gmra.mrb[12].mxu0 %vm158_vm2, %v1212_v31  ;;  %v1258_v32 = vrot.slane %v1212_v31, 4 }
 0x9fe   :  { %1490 = vmatpush3.bf16.msra.mxu0 %v1838_v29  ;;  %1491 = vmatprep.mubr.msk.bf16.mxu0 %vm1648_vm0, %v1647_v0 }
 0xa09   :  { %1492 = vmatmul.mubr.msk.bf16.vlgmr.msra.gmra.mrb[12].mxu0 %vm158_vm2, %v1258_v32 }
 0xadc   :  { %v1296_v24 = vpop.f32.mrb[12].mxu0 }
 0xadd   :  { %1303 = vst.msk [vmem:[#allocation7 + $0x8] sm:$0xff] %vm76_vm1, %v1296_v24  ;;  %v1493_v33 = vpop.f32.mrb[13].mxu0 }
 0xade   :  { %v1299_v34 = vpop.f32.mrb[14].mxu0 }
 0xadf   :  { %1624 = shalt.err (!%p1621_p6)
}
 0xae0   :  { %s1625_s29 = scalar_lea.hbm %s1914_s6, 256 }
 0xae1   :  { %p1626_p7 = scmp.ne.s32.totalorder %s1914_s6, %s1625_s29  ;;  %p1629_p8 = scmp.lt.u32.totalorder %s1625_s29, %s1914_s6 }
 0xae3   :  { %p1631_p9 = pnand %p1629_p8, %p1626_p7 }
 0xae5   :  { %1634 = shalt.err (!%p1631_p9)
}
 0xae6   :  { %1315 = dma.vmem_to_hbm [thread:$0]  %s1310_s5, 256, %s1914_s6, [#allocation4], %s1645_s0, %s1645_s0, %s1646_s21   ;;  %v1494_v0 = vpop.f32.mrb[15].mxu0 }
 0xae7   :  { %1639 = dma.done.wait [#allocation4], 256  }
 0xae8   :  { %1640 = vsyncadd [#allocation4], 4294967040 }
 0xae9   :  { %1319 = vsyncpa [#allocation3], 1 }
 0xaea   :  { %1320 = vsyncpa [#allocation6], 1 }
 0xaeb   :  { %1321 = vsyncpa [#allocation4], 1 }

</bundles_post_ra>
